<compile_context>
chip_gen: v6e
topology: v6e:2x2x1
jax: 0.10.0
libtpu: 0.0.40
codegen_flags: <defaults>
</compile_context>

<pallas_src>
import functools

import numpy as np
import jax
import jax.numpy as jnp
from jax import lax
from jax.experimental import pallas as pl
from jax.experimental.pallas import tpu as pltpu


def _criterion_kernel(cm_d_ref, gt_d_ref, gt_t_ref, rowb_ref, s0x_ref, s0y_ref,
                      mk0b_ref, mk0x_ref, mk0y_ref, mk1x_ref, mk1y_ref,
                      s1xt_ref, s1yt_ref,
                      out_ref,
                      nll_acc, gts_acc, p_acc,
                      *, batch, n_rows, mask_tail):
    t = pl.program_id(0)
    n_tiles = pl.num_programs(0)
    dr, _ = cm_d_ref.shape                     # (tile_n // 8, 8 * S)
    tile_n, S = gt_t_ref.shape                 # (tile_n, S)
    M = mk0b_ref.shape[0]

    # ---- init accumulators on the first tile --------------------------------
    @pl.when(t == 0)
    def _():
        nll_acc[...] = jnp.zeros_like(nll_acc)
        gts_acc[...] = jnp.zeros_like(gts_acc)
        p_acc[...] = jnp.zeros_like(p_acc)

    # ---- coarse NLL + sum(gt) on the lane-dense (tile_n/8, 8*S) view --------
    cm_d = cm_d_ref[...]
    gt_d = gt_d_ref[...]
    nll = -gt_d * jnp.log(cm_d + 1e-6)
    if mask_tail:
        # last grid tile can read out-of-bounds rows -> mask by global dense row
        row_ok = (t * dr + lax.broadcasted_iota(jnp.int32, (dr, 1), 0)) < (n_rows // 8)
        nll = jnp.where(row_ok, nll, 0.0)
        gt_d = jnp.where(row_ok, gt_d, 0.0)
    nll_acc[...] += nll
    gts_acc[...] += gt_d

    # ---- match predicted mkpts0 against this tile's gt rows -----------------
    # rows of the mask = predictions (M sublanes), cols = flattened gt rows
    # (tile_n lanes) -> lane-dense.  Exact float equality mirrors the reference.
    match = ((rowb_ref[...] == mk0b_ref[...]) &
             (s0x_ref[...] == mk0x_ref[...]) &
             (s0y_ref[...] == mk0y_ref[...]))                      # (M, tile_n)
    gt_t = gt_t_ref[...]
    if mask_tail:
        lane_ok = (t * tile_n +
                   lax.broadcasted_iota(jnp.int32, (1, tile_n), 1)) < n_rows
        match = match & lane_ok
        row_ok_t = (t * tile_n +
                    lax.broadcasted_iota(jnp.int32, (tile_n, 1), 0)) < n_rows
        gt_t = jnp.where(row_ok_t, gt_t, 0.0)   # keep NaN/Inf garbage out of the MXU
    matchf = match.astype(jnp.float32)

    # Per-match gt row weights: P[m, j] = sum_n match[m, n] * gt[n, j].
    # Assumes gt rows are one-hot and (batch, x0, y0) rows are unique, so a
    # matched valid row contributes exactly its one-hot gt row (invalid rows
    # are all-zero and contribute nothing -> no separate validity mask needed).
    p_acc[...] += jnp.dot(matchf, gt_t, preferred_element_type=jnp.float32)

    # ---- finalize on the last tile: fused scalar epilogue --------------------
    @pl.when(t == n_tiles - 1)
    def _():
        inv_b = 1.0 / float(batch)

        coarse = jnp.sum(nll_acc[...]) * inv_b
        gt_total = jnp.sum(gts_acc[...])

        P = p_acc[...]                                             # (M, S)
        cnt = jnp.sum(P, axis=1, keepdims=True)                    # (M, 1)
        found = (cnt > 0.0).astype(jnp.float32)
        inv_cnt = jnp.where(cnt > 0.0, 1.0 / jnp.maximum(cnt, 1e-12), 0.0)

        # gather samples1[b_m, j_m]:  (P @ samples1^T) then select the match's batch
        b_oh = (mk0b_ref[...] ==
                lax.broadcasted_iota(jnp.int32, (1, batch), 1)).astype(jnp.float32)
        qx = jnp.dot(P, s1xt_ref[...], preferred_element_type=jnp.float32)  # (M, B)
        qy = jnp.dot(P, s1yt_ref[...], preferred_element_type=jnp.float32)
        gt1x = jnp.sum(b_oh * qx, axis=1, keepdims=True) * inv_cnt          # (M, 1)
        gt1y = jnp.sum(b_oh * qy, axis=1, keepdims=True) * inv_cnt

        dx = gt1x - mk1x_ref[...]
        dy = gt1y - mk1y_ref[...]
        dist = jnp.sqrt(dx * dx + dy * dy) * found
        n_pairs = jnp.sum(found)
        mean_d = jnp.sum(dist) / jnp.maximum(n_pairs, 1.0)
        fine = jnp.where(n_pairs > 0.0, mean_d * inv_b, 2.0)       # "no paired" fallback
        fine = jnp.where(gt_total > 0.0, fine, 1e-6)               # "no gt" fallback

        out_ref[0, 0] = coarse
        out_ref[0, 1] = fine
        out_ref[0, 2] = n_pairs
        out_ref[0, 3] = gt_total


def matching_criterion(preds, targets, weights=(1.0, 1000.0), max_tile_n=2048):
    """Pallas implementation of MatchingCriterion.forward."""
    cm = preds['cm_matrix'].astype(jnp.float32)
    gt = targets['gt_matrix'].astype(jnp.float32)
    s0 = preds['samples0'].astype(jnp.float32)
    s1 = preds['samples1'].astype(jnp.float32)
    mk0 = preds['mkpts0'].astype(jnp.float32)
    mk1 = preds['mkpts1'].astype(jnp.float32)
    h_gt = targets['h_gt'].astype(jnp.float32)

    B, L, S = cm.shape
    M = mk0.shape[0]
    N = B * L

    # TODO(synk): cv2.findHomography (RANSAC) in coarse_h has no JAX/Pallas
    # equivalent; we use the module's own identity-homography fallback path.
    # h_loss is 9 numbers -> computed in plain JAX (no VMEM shipping).
    h = jnp.eye(3, dtype=jnp.float32)
    h_loss = jnp.sum(jnp.abs(h - h_gt + 1e-6))

    # ---- wrapper-side layout plumbing (free reshapes + tiny lane vectors) ---
    cm_flat = cm.reshape(N, S)
    gt_flat = gt.reshape(N, S)
    rowb = jnp.repeat(jnp.arange(B, dtype=jnp.int32), L)           # (N,)
    s0x = s0[..., 0].reshape(N)
    s0y = s0[..., 1].reshape(N)

    n_pad8 = ((N + 7) // 8) * 8
    if n_pad8 != N:
        # rare: only needed so the lane-dense (N/8, 8*S) reshape exists
        pad = n_pad8 - N
        cm_flat = jnp.pad(cm_flat, ((0, pad), (0, 0)), constant_values=1.0)
        gt_flat = jnp.pad(gt_flat, ((0, pad), (0, 0)))
        rowb = jnp.pad(rowb, (0, pad), constant_values=B)   # never matches a pred
        s0x = jnp.pad(s0x, (0, pad))
        s0y = jnp.pad(s0y, (0, pad))
    n_rows = n_pad8

    cm_dense = cm_flat.reshape(n_rows // 8, 8 * S)   # free row-major reshape
    gt_dense = gt_flat.reshape(n_rows // 8, 8 * S)
    rowb = rowb.reshape(1, n_rows)
    s0x = s0x.reshape(1, n_rows)
    s0y = s0y.reshape(1, n_rows)

    mk0b = mk0[:, 0].astype(jnp.int32).reshape(M, 1)
    mk0x = mk0[:, 1].reshape(M, 1)
    mk0y = mk0[:, 2].reshape(M, 1)
    mk1x = mk1[:, 0].reshape(M, 1)
    mk1y = mk1[:, 1].reshape(M, 1)
    s1xt = s1[..., 0].T                       # (S, B)
    s1yt = s1[..., 1].T                       # (S, B)

    # ---- tile size: as large as possible, lane-aligned -----------------------
    if n_rows <= max_tile_n:
        tile_n = n_rows                       # single tile (full-dim blocks)
    else:
        tile_n = max(128, (max_tile_n // 128) * 128)
    grid = (pl.cdiv(n_rows, tile_n),)
    mask_tail = (n_rows % tile_n) != 0        # static: in-kernel masking only if needed

    d_spec = pl.BlockSpec((tile_n // 8, 8 * S), lambda t: (t, 0))
    t_spec = pl.BlockSpec((tile_n, S), lambda t: (t, 0))
    v_spec = pl.BlockSpec((1, tile_n), lambda t: (0, t))
    full_vmem = pl.BlockSpec(memory_space=pltpu.MemorySpace.VMEM)

    out = pl.pallas_call(
        functools.partial(_criterion_kernel, batch=B, n_rows=n_rows,
                          mask_tail=mask_tail),
        out_shape=jax.ShapeDtypeStruct((1, 4), jnp.float32),
        grid=grid,
        in_specs=[
            d_spec,          # cm lane-dense (N/8, 8S)
            d_spec,          # gt lane-dense (N/8, 8S)
            t_spec,          # gt tiled (N, S) -> MXU RHS for the match matmul
            v_spec,          # row batch ids (1, N) int32
            v_spec,          # s0 x (1, N)
            v_spec,          # s0 y (1, N)
            full_vmem,       # mkpts0 batch (M, 1) int32
            full_vmem,       # mkpts0 x (M, 1)
            full_vmem,       # mkpts0 y (M, 1)
            full_vmem,       # mkpts1 x (M, 1)
            full_vmem,       # mkpts1 y (M, 1)
            full_vmem,       # samples1 x^T (S, B)
            full_vmem,       # samples1 y^T (S, B)
        ],
        out_specs=pl.BlockSpec((1, 4), lambda t: (0, 0),
                               memory_space=pltpu.MemorySpace.SMEM),
        scratch_shapes=[
            pltpu.VMEM((tile_n // 8, 8 * S), jnp.float32),   # NLL vector partial
            pltpu.VMEM((tile_n // 8, 8 * S), jnp.float32),   # sum(gt) vector partial
            pltpu.VMEM((M, S), jnp.float32),                 # per-match gt row weights
        ],
        compiler_params=pltpu.CompilerParams(
            dimension_semantics=("arbitrary",),
            vmem_limit_bytes=48 * 1024 * 1024),
    )(cm_dense, gt_dense, gt_flat, rowb, s0x, s0y,
      mk0b, mk0x, mk0y, mk1x, mk1y, s1xt, s1yt)

    coarse_loss = out[0, 0]
    fine_loss = out[0, 1]
    losses = h_loss + weights[0] * coarse_loss + weights[1] * fine_loss
    return {'losses': losses, 'coarse_loss': coarse_loss,
            'h_loss': h_loss, 'fine_loss': fine_loss}


def _reference(cm, gt, s0, s1, mk0, mk1, h_gt, weights=(1.0, 1000.0)):
    """Plain-JAX reference with identical semantics (for validation)."""
    B, L, S = cm.shape
    h = jnp.eye(3, dtype=jnp.float32)
    h_loss = jnp.sum(jnp.abs(h - h_gt + 1e-6))
    coarse = jnp.sum(-gt * jnp.log(cm + 1e-6)) / B
    gt_valid = jnp.max(gt, axis=2) > 0
    j_ids = jnp.argmax(gt, axis=2)
    gt_mk1 = jnp.take_along_axis(s1, j_ids[:, :, None], axis=1)          # (B, L, 2)
    b_ids = jnp.broadcast_to(jnp.arange(B, dtype=jnp.float32)[:, None], (B, L))
    gt0 = jnp.concatenate([b_ids[..., None], s0], axis=-1).reshape(B * L, 3)
    gt1 = gt_mk1.reshape(B * L, 2)
    valid = gt_valid.reshape(B * L)
    eq = jnp.all(mk0[:, None, :] == gt0[None, :, :], axis=-1) & valid[None, :]
    found = jnp.any(eq, axis=1)
    N = B * L
    idx = jnp.min(jnp.where(eq, jnp.arange(N)[None, :], N), axis=1)
    sel_gt1 = gt1[jnp.clip(idx, 0, N - 1)]
    d = jnp.sqrt(jnp.sum((sel_gt1 - mk1) ** 2, axis=1))
    n_pairs = jnp.sum(found.astype(jnp.float32))
    mean_d = jnp.sum(d * found) / jnp.maximum(n_pairs, 1.0)
    fine = jnp.where(n_pairs > 0, mean_d / B, 2.0)
    fine = jnp.where(jnp.sum(valid) > 0, fine, 1e-6)
    losses = h_loss + weights[0] * coarse + weights[1] * fine
    return {'losses': losses, 'coarse_loss': coarse, 'h_loss': h_loss, 'fine_loss': fine}


if __name__ == "__main__":
    B, L, S, M = 2, 96, 16, 8          # N = 192 -> single 192-row tile
    key = jax.random.PRNGKey(0)
    k1, k2, k3, k4 = jax.random.split(key, 4)

    # deterministic coarse query grid (12 x 8 cells) and reference grid (4 x 4)
    xs0 = (jnp.arange(L) % 12).astype(jnp.float32) * 8.0
    ys0 = (jnp.arange(L) // 12).astype(jnp.float32) * 8.0
    samples0 = jnp.broadcast_to(jnp.stack([xs0, ys0], axis=-1), (B, L, 2))
    xs1 = (jnp.arange(S) % 4).astype(jnp.float32) * 8.0 + 3.0
    ys1 = (jnp.arange(S) // 4).astype(jnp.float32) * 8.0 + 3.0
    samples1 = jnp.broadcast_to(jnp.stack([xs1, ys1], axis=-1), (B, S, 2))

    # ground-truth matches: query cell 7*t -> reference cell (t + b) % S, t in [0, 10)
    gt_np = np.zeros((B, L, S), np.float32)
    for b in range(B):
        for t in range(10):
            gt_np[b, 7 * t, (t + b) % S] = 1.0
    gt_matrix = jnp.asarray(gt_np)

    cm_matrix = jax.nn.softmax(jax.random.normal(k1, (B, L, S), jnp.float32), axis=-1)

    # predicted matches; two of them ((0, 5) and (1, 80)) have no gt counterpart
    s0_np = np.asarray(samples0)
    s1_np = np.asarray(samples1)
    noise = np.asarray(jax.random.normal(k2, (M, 2), jnp.float32)) * 0.5
    rand1 = np.asarray(jax.random.uniform(k4, (M, 2), jnp.float32)) * 30.0
    pred = [(0, 0, 0), (0, 1, 7), (0, 3, 21), (0, None, 5),
            (1, 2, 14), (1, 5, 35), (1, 7, 49), (1, None, 80)]
    mk0_np = np.zeros((M, 3), np.float32)
    mk1_np = np.zeros((M, 2), np.float32)
    for m, (b, t, i) in enumerate(pred):
        mk0_np[m] = [b, s0_np[b, i, 0], s0_np[b, i, 1]]
        if t is None:
            mk1_np[m] = rand1[m]
        else:
            mk1_np[m] = s1_np[b, (t + b) % S] + noise[m]
    mkpts0 = jnp.asarray(mk0_np)
    mkpts1 = jnp.asarray(mk1_np)

    h_gt = jnp.eye(3, dtype=jnp.float32) + 0.01 * jax.random.normal(k3, (3, 3), jnp.float32)

    preds = {'cm_matrix': cm_matrix, 'samples0': samples0, 'samples1': samples1,
             'mkpts0': mkpts0, 'mkpts1': mkpts1}
    targets = {'gt_matrix': gt_matrix, 'h_gt': h_gt}

    out = matching_criterion(preds, targets)
    out = jax.tree_util.tree_map(jax.block_until_ready, out)

    ref = _reference(cm_matrix, gt_matrix, samples0, samples1, mkpts0, mkpts1, h_gt)
    for k in ('h_loss', 'coarse_loss', 'fine_loss', 'losses'):
        assert np.allclose(np.asarray(out[k]), np.asarray(ref[k]),
                           rtol=1e-4, atol=1e-3), (k, out[k], ref[k])

    print("KERNEL_OK")
</pallas_src>

<mosaic_0001>
module attributes {stable_mosaic.version = 11 : i64} {
  func.func @_criterion_kernel(%arg0: i32, %arg1: memref<24x128xf32, #tpu.memory_space<vmem>>, %arg2: memref<24x128xf32, #tpu.memory_space<vmem>>, %arg3: memref<192x16xf32, #tpu.memory_space<vmem>>, %arg4: memref<1x192xi32, #tpu.memory_space<vmem>>, %arg5: memref<1x192xf32, #tpu.memory_space<vmem>>, %arg6: memref<1x192xf32, #tpu.memory_space<vmem>>, %arg7: memref<8x1xi32, #tpu.memory_space<vmem>>, %arg8: memref<8x1xf32, #tpu.memory_space<vmem>>, %arg9: memref<8x1xf32, #tpu.memory_space<vmem>>, %arg10: memref<8x1xf32, #tpu.memory_space<vmem>>, %arg11: memref<8x1xf32, #tpu.memory_space<vmem>>, %arg12: memref<16x2xf32, #tpu.memory_space<vmem>>, %arg13: memref<16x2xf32, #tpu.memory_space<vmem>>, %arg14: memref<1x4xf32, #tpu.memory_space<smem>>, %arg15: memref<24x128xf32, #tpu.memory_space<vmem>>, %arg16: memref<24x128xf32, #tpu.memory_space<vmem>>, %arg17: memref<8x16xf32, #tpu.memory_space<vmem>>) attributes {dimension_semantics = [#tpu.dimension_semantics<arbitrary>], iteration_bounds = array<i64: 1>, scalar_prefetch = 0 : i64, scratch_operands = 3 : i64, tpu.core_type = #tpu.core_type<tc>, window_params = [{transform_indices = @transform_0, window_bounds = array<i64: 24, 128>}, {transform_indices = @transform_1, window_bounds = array<i64: 24, 128>}, {transform_indices = @transform_2, window_bounds = array<i64: 192, 16>}, {transform_indices = @transform_3, window_bounds = array<i64: 1, 192>}, {transform_indices = @transform_4, window_bounds = array<i64: 1, 192>}, {transform_indices = @transform_5, window_bounds = array<i64: 1, 192>}, {pipeline_mode = #tpu.pipeline_mode<synchronous>, transform_indices = @transform_6, window_bounds = array<i64: 8, 1>}, {pipeline_mode = #tpu.pipeline_mode<synchronous>, transform_indices = @transform_7, window_bounds = array<i64: 8, 1>}, {pipeline_mode = #tpu.pipeline_mode<synchronous>, transform_indices = @transform_8, window_bounds = array<i64: 8, 1>}, {pipeline_mode = #tpu.pipeline_mode<synchronous>, transform_indices = @transform_9, window_bounds = array<i64: 8, 1>}, {pipeline_mode = #tpu.pipeline_mode<synchronous>, transform_indices = @transform_10, window_bounds = array<i64: 8, 1>}, {pipeline_mode = #tpu.pipeline_mode<synchronous>, transform_indices = @transform_11, window_bounds = array<i64: 16, 2>}, {pipeline_mode = #tpu.pipeline_mode<synchronous>, transform_indices = @transform_12, window_bounds = array<i64: 16, 2>}, {transform_indices = @transform_13, window_bounds = array<i64: 1, 4>}]} {
    %c0_i32 = arith.constant 0 : i32
    %0 = arith.cmpi eq, %arg0, %c0_i32 : i32
    %1 = arith.extui %0 : i1 to i32
    %c0_i32_0 = arith.constant 0 : i32
    %2 = arith.cmpi ne, %1, %c0_i32_0 : i32
    scf.if %2 {
      %cst_34 = arith.constant 0.000000e+00 : f32
      %44 = vector.broadcast %cst_34 : f32 to vector<24x128xf32>
      %c0_35 = arith.constant 0 : index
      %c0_36 = arith.constant 0 : index
      %45 = vector.load %arg15[%c0_35, %c0_36] : memref<24x128xf32, #tpu.memory_space<vmem>>, vector<24x128xf32>
      tpu.vector_store %arg15[%c0_35, %c0_36], %44 {strides = array<i32>} : memref<24x128xf32, #tpu.memory_space<vmem>>, vector<24x128xf32>,
      %cst_37 = arith.constant 0.000000e+00 : f32
      %46 = vector.broadcast %cst_37 : f32 to vector<24x128xf32>
      %c0_38 = arith.constant 0 : index
      %c0_39 = arith.constant 0 : index
      %47 = vector.load %arg16[%c0_38, %c0_39] : memref<24x128xf32, #tpu.memory_space<vmem>>, vector<24x128xf32>
      tpu.vector_store %arg16[%c0_38, %c0_39], %46 {strides = array<i32>} : memref<24x128xf32, #tpu.memory_space<vmem>>, vector<24x128xf32>,
      %cst_40 = arith.constant 0.000000e+00 : f32
      %48 = vector.broadcast %cst_40 : f32 to vector<8x16xf32>
      %c0_41 = arith.constant 0 : index
      %c0_42 = arith.constant 0 : index
      %49 = vector.load %arg17[%c0_41, %c0_42] : memref<8x16xf32, #tpu.memory_space<vmem>>, vector<8x16xf32>
      tpu.vector_store %arg17[%c0_41, %c0_42], %48 {strides = array<i32>} : memref<8x16xf32, #tpu.memory_space<vmem>>, vector<8x16xf32>,
    } else {
    }
    %c0 = arith.constant 0 : index
    %c0_1 = arith.constant 0 : index
    %3 = vector.load %arg1[%c0, %c0_1] : memref<24x128xf32, #tpu.memory_space<vmem>>, vector<24x128xf32>
    %c0_2 = arith.constant 0 : index
    %c0_3 = arith.constant 0 : index
    %4 = vector.load %arg2[%c0_2, %c0_3] : memref<24x128xf32, #tpu.memory_space<vmem>>, vector<24x128xf32>
    %cst = arith.constant 0.000000e+00 : f32
    %5 = vector.broadcast %cst : f32 to vector<24x128xf32>
    %6 = arith.subf %5, %4 : vector<24x128xf32>
    %cst_4 = arith.constant 9.99999997E-7 : f32
    %7 = vector.broadcast %cst_4 : f32 to vector<24x128xf32>
    %8 = arith.addf %3, %7 : vector<24x128xf32>
    %9 = math.log %8 : vector<24x128xf32>
    %10 = arith.mulf %6, %9 : vector<24x128xf32>
    %c0_5 = arith.constant 0 : index
    %c0_6 = arith.constant 0 : index
    %11 = vector.load %arg15[%c0_5, %c0_6] : memref<24x128xf32, #tpu.memory_space<vmem>>, vector<24x128xf32>
    %12 = arith.addf %11, %10 : vector<24x128xf32>
    %c0_7 = arith.constant 0 : index
    %c0_8 = arith.constant 0 : index
    %13 = vector.load %arg15[%c0_7, %c0_8] : memref<24x128xf32, #tpu.memory_space<vmem>>, vector<24x128xf32>
    tpu.vector_store %arg15[%c0_7, %c0_8], %12 {strides = array<i32>} : memref<24x128xf32, #tpu.memory_space<vmem>>, vector<24x128xf32>,
    %c0_9 = arith.constant 0 : index
    %c0_10 = arith.constant 0 : index
    %14 = vector.load %arg16[%c0_9, %c0_10] : memref<24x128xf32, #tpu.memory_space<vmem>>, vector<24x128xf32>
    %15 = arith.addf %14, %4 : vector<24x128xf32>
    %c0_11 = arith.constant 0 : index
    %c0_12 = arith.constant 0 : index
    %16 = vector.load %arg16[%c0_11, %c0_12] : memref<24x128xf32, #tpu.memory_space<vmem>>, vector<24x128xf32>
    tpu.vector_store %arg16[%c0_11, %c0_12], %15 {strides = array<i32>} : memref<24x128xf32, #tpu.memory_space<vmem>>, vector<24x128xf32>,
    %c0_13 = arith.constant 0 : index
    %c0_14 = arith.constant 0 : index
    %17 = vector.load %arg4[%c0_13, %c0_14] : memref<1x192xi32, #tpu.memory_space<vmem>>, vector<1x192xi32>
    %c0_15 = arith.constant 0 : index
    %c0_16 = arith.constant 0 : index
    %18 = vector.load %arg7[%c0_15, %c0_16] : memref<8x1xi32, #tpu.memory_space<vmem>>, vector<8x1xi32>
    %19 = vector.broadcast %17 : vector<1x192xi32> to vector<8x192xi32>
    %20 = vector.broadcast %18 : vector<8x1xi32> to vector<8x192xi32>
    %21 = arith.cmpi eq, %19, %20 : vector<8x192xi32>
    %c0_17 = arith.constant 0 : index
    %c0_18 = arith.constant 0 : index
    %22 = vector.load %arg5[%c0_17, %c0_18] : memref<1x192xf32, #tpu.memory_space<vmem>>, vector<1x192xf32>
    %c0_19 = arith.constant 0 : index
    %c0_20 = arith.constant 0 : index
    %23 = vector.load %arg8[%c0_19, %c0_20] : memref<8x1xf32, #tpu.memory_space<vmem>>, vector<8x1xf32>
    %24 = vector.broadcast %22 : vector<1x192xf32> to vector<8x192xf32>
    %25 = vector.broadcast %23 : vector<8x1xf32> to vector<8x192xf32>
    %26 = arith.cmpf oeq, %24, %25 : vector<8x192xf32>
    %27 = arith.andi %21, %26 : vector<8x192xi1>
    %c0_21 = arith.constant 0 : index
    %c0_22 = arith.constant 0 : index
    %28 = vector.load %arg6[%c0_21, %c0_22] : memref<1x192xf32, #tpu.memory_space<vmem>>, vector<1x192xf32>
    %c0_23 = arith.constant 0 : index
    %c0_24 = arith.constant 0 : index
    %29 = vector.load %arg9[%c0_23, %c0_24] : memref<8x1xf32, #tpu.memory_space<vmem>>, vector<8x1xf32>
    %30 = vector.broadcast %28 : vector<1x192xf32> to vector<8x192xf32>
    %31 = vector.broadcast %29 : vector<8x1xf32> to vector<8x192xf32>
    %32 = arith.cmpf oeq, %30, %31 : vector<8x192xf32>
    %33 = arith.andi %27, %32 : vector<8x192xi1>
    %c0_25 = arith.constant 0 : index
    %c0_26 = arith.constant 0 : index
    %34 = vector.load %arg3[%c0_25, %c0_26] : memref<192x16xf32, #tpu.memory_space<vmem>>, vector<192x16xf32>
    %35 = arith.extui %33 : vector<8x192xi1> to vector<8x192xi32>
    %36 = arith.sitofp %35 : vector<8x192xi32> to vector<8x192xf32>
    %c0_27 = arith.constant 0 : index
    %c0_28 = arith.constant 0 : index
    %37 = vector.load %arg17[%c0_27, %c0_28] : memref<8x16xf32, #tpu.memory_space<vmem>>, vector<8x16xf32>
    %cst_29 = arith.constant dense<0.000000e+00> : vector<8x16xf32>
    %38 = tpu.matmul %36, %34, %cst_29 {dimension_numbers = #tpu.dot_dimension_numbers<[1], [0], [0], [1], [0, 0, 1, 1], [], []>} : vector<8x192xf32>, vector<192x16xf32>, vector<8x16xf32> -> vector<8x16xf32>
    %39 = arith.addf %37, %38 : vector<8x16xf32>
    %c0_30 = arith.constant 0 : index
    %c0_31 = arith.constant 0 : index
    %40 = vector.load %arg17[%c0_30, %c0_31] : memref<8x16xf32, #tpu.memory_space<vmem>>, vector<8x16xf32>
    tpu.vector_store %arg17[%c0_30, %c0_31], %39 {strides = array<i32>} : memref<8x16xf32, #tpu.memory_space<vmem>>, vector<8x16xf32>,
    %c0_i32_32 = arith.constant 0 : i32
    %41 = arith.cmpi eq, %arg0, %c0_i32_32 : i32
    %42 = arith.extui %41 : i1 to i32
    %c0_i32_33 = arith.constant 0 : i32
    %43 = arith.cmpi ne, %42, %c0_i32_33 : i32
    scf.if %43 {
      %c0_34 = arith.constant 0 : index
      %c0_35 = arith.constant 0 : index
      %44 = vector.load %arg15[%c0_34, %c0_35] : memref<24x128xf32, #tpu.memory_space<vmem>>, vector<24x128xf32>
      %45 = vector.shape_cast %44 : vector<24x128xf32> to vector<1x24x128xf32>
      %cst_36 = arith.constant dense<0.000000e+00> : vector<1xf32>
      %46 = vector.multi_reduction <add>, %45, %cst_36 [1, 2] : vector<1x24x128xf32> to vector<1xf32>
      %47 = vector.shape_cast %46 : vector<1xf32> to vector<1x1x1xf32>
      %48 = vector.extract %47[0, 0, 0] : f32 from vector<1x1x1xf32>
      %cst_37 = arith.constant 5.000000e-01 : f32
      %49 = arith.mulf %48, %cst_37 : f32
      %c0_38 = arith.constant 0 : index
      %c0_39 = arith.constant 0 : index
      %50 = vector.load %arg16[%c0_38, %c0_39] : memref<24x128xf32, #tpu.memory_space<vmem>>, vector<24x128xf32>
      %51 = vector.shape_cast %50 : vector<24x128xf32> to vector<1x24x128xf32>
      %cst_40 = arith.constant dense<0.000000e+00> : vector<1xf32>
      %52 = vector.multi_reduction <add>, %51, %cst_40 [1, 2] : vector<1x24x128xf32> to vector<1xf32>
      %53 = vector.shape_cast %52 : vector<1xf32> to vector<1x1x1xf32>
      %54 = vector.extract %53[0, 0, 0] : f32 from vector<1x1x1xf32>
      %c0_41 = arith.constant 0 : index
      %c0_42 = arith.constant 0 : index
      %55 = vector.load %arg17[%c0_41, %c0_42] : memref<8x16xf32, #tpu.memory_space<vmem>>, vector<8x16xf32>
      %cst_43 = arith.constant dense<0.000000e+00> : vector<8xf32>
      %56 = vector.multi_reduction <add>, %55, %cst_43 [1] : vector<8x16xf32> to vector<8xf32>
      %57 = vector.shape_cast %56 : vector<8xf32> to vector<8x1xf32>
      %cst_44 = arith.constant 0.000000e+00 : f32
      %58 = vector.broadcast %cst_44 : f32 to vector<8x1xf32>
      %59 = arith.cmpf ogt, %57, %58 : vector<8x1xf32>
      %60 = arith.extui %59 : vector<8x1xi1> to vector<8x1xi32>
      %61 = arith.sitofp %60 : vector<8x1xi32> to vector<8x1xf32>
      %cst_45 = arith.constant 0.000000e+00 : f32
      %62 = vector.broadcast %cst_45 : f32 to vector<8x1xf32>
      %63 = arith.cmpf ogt, %57, %62 : vector<8x1xf32>
      %cst_46 = arith.constant 9.99999996E-13 : f32
      %64 = vector.broadcast %cst_46 : f32 to vector<8x1xf32>
      %65 = arith.maximumf %57, %64 : vector<8x1xf32>
      %cst_47 = arith.constant 1.000000e+00 : f32
      %66 = vector.broadcast %cst_47 : f32 to vector<8x1xf32>
      %67 = arith.divf %66, %65 : vector<8x1xf32>
      %cst_48 = arith.constant 0.000000e+00 : f32
      %68 = vector.broadcast %cst_48 : f32 to vector<8x1xf32>
      %69 = arith.select %63, %67, %68 : vector<8x1xi1>, vector<8x1xf32>
      %c0_49 = arith.constant 0 : index
      %c0_50 = arith.constant 0 : index
      %70 = vector.load %arg7[%c0_49, %c0_50] : memref<8x1xi32, #tpu.memory_space<vmem>>, vector<8x1xi32>
      %71 = tpu.iota {dimensions = array<i32: 1>} : vector<1x2xi32>
      %72 = vector.broadcast %70 : vector<8x1xi32> to vector<8x2xi32>
      %73 = vector.broadcast %71 : vector<1x2xi32> to vector<8x2xi32>
      %74 = arith.cmpi eq, %72, %73 : vector<8x2xi32>
      %75 = arith.extui %74 : vector<8x2xi1> to vector<8x2xi32>
      %76 = arith.sitofp %75 : vector<8x2xi32> to vector<8x2xf32>
      %c0_51 = arith.constant 0 : index
      %c0_52 = arith.constant 0 : index
      %77 = vector.load %arg12[%c0_51, %c0_52] : memref<16x2xf32, #tpu.memory_space<vmem>>, vector<16x2xf32>
      %cst_53 = arith.constant dense<0.000000e+00> : vector<8x2xf32>
      %78 = tpu.matmul %55, %77, %cst_53 {dimension_numbers = #tpu.dot_dimension_numbers<[1], [0], [0], [1], [0, 0, 1, 1], [], []>} : vector<8x16xf32>, vector<16x2xf32>, vector<8x2xf32> -> vector<8x2xf32>
      %c0_54 = arith.constant 0 : index
      %c0_55 = arith.constant 0 : index
      %79 = vector.load %arg13[%c0_54, %c0_55] : memref<16x2xf32, #tpu.memory_space<vmem>>, vector<16x2xf32>
      %cst_56 = arith.constant dense<0.000000e+00> : vector<8x2xf32>
      %80 = tpu.matmul %55, %79, %cst_56 {dimension_numbers = #tpu.dot_dimension_numbers<[1], [0], [0], [1], [0, 0, 1, 1], [], []>} : vector<8x16xf32>, vector<16x2xf32>, vector<8x2xf32> -> vector<8x2xf32>
      %81 = arith.mulf %76, %78 : vector<8x2xf32>
      %cst_57 = arith.constant dense<0.000000e+00> : vector<8xf32>
      %82 = vector.multi_reduction <add>, %81, %cst_57 [1] : vector<8x2xf32> to vector<8xf32>
      %83 = vector.shape_cast %82 : vector<8xf32> to vector<8x1xf32>
      %84 = arith.mulf %83, %69 : vector<8x1xf32>
      %85 = arith.mulf %76, %80 : vector<8x2xf32>
      %cst_58 = arith.constant dense<0.000000e+00> : vector<8xf32>
      %86 = vector.multi_reduction <add>, %85, %cst_58 [1] : vector<8x2xf32> to vector<8xf32>
      %87 = vector.shape_cast %86 : vector<8xf32> to vector<8x1xf32>
      %88 = arith.mulf %87, %69 : vector<8x1xf32>
      %c0_59 = arith.constant 0 : index
      %c0_60 = arith.constant 0 : index
      %89 = vector.load %arg10[%c0_59, %c0_60] : memref<8x1xf32, #tpu.memory_space<vmem>>, vector<8x1xf32>
      %90 = arith.subf %84, %89 : vector<8x1xf32>
      %c0_61 = arith.constant 0 : index
      %c0_62 = arith.constant 0 : index
      %91 = vector.load %arg11[%c0_61, %c0_62] : memref<8x1xf32, #tpu.memory_space<vmem>>, vector<8x1xf32>
      %92 = arith.subf %88, %91 : vector<8x1xf32>
      %93 = arith.mulf %90, %90 : vector<8x1xf32>
      %94 = arith.mulf %92, %92 : vector<8x1xf32>
      %95 = arith.addf %93, %94 : vector<8x1xf32>
      %96 = math.sqrt %95 : vector<8x1xf32>
      %97 = arith.mulf %96, %61 : vector<8x1xf32>
      %98 = vector.shape_cast %61 : vector<8x1xf32> to vector<1x8x1xf32>
      %cst_63 = arith.constant dense<0.000000e+00> : vector<1xf32>
      %99 = vector.multi_reduction <add>, %98, %cst_63 [1, 2] : vector<1x8x1xf32> to vector<1xf32>
      %100 = vector.shape_cast %99 : vector<1xf32> to vector<1x1x1xf32>
      %101 = vector.extract %100[0, 0, 0] : f32 from vector<1x1x1xf32>
      %102 = vector.shape_cast %97 : vector<8x1xf32> to vector<1x8x1xf32>
      %cst_64 = arith.constant dense<0.000000e+00> : vector<1xf32>
      %103 = vector.multi_reduction <add>, %102, %cst_64 [1, 2] : vector<1x8x1xf32> to vector<1xf32>
      %104 = vector.shape_cast %103 : vector<1xf32> to vector<1x1x1xf32>
      %105 = vector.extract %104[0, 0, 0] : f32 from vector<1x1x1xf32>
      %cst_65 = arith.constant 1.000000e+00 : f32
      %106 = arith.maximumf %101, %cst_65 : f32
      %107 = arith.divf %105, %106 : f32
      %cst_66 = arith.constant 0.000000e+00 : f32
      %108 = arith.cmpf ogt, %101, %cst_66 : f32
      %cst_67 = arith.constant 5.000000e-01 : f32
      %109 = arith.mulf %107, %cst_67 : f32
      %cst_68 = arith.constant 2.000000e+00 : f32
      %110 = arith.select %108, %109, %cst_68 : f32
      %cst_69 = arith.constant 0.000000e+00 : f32
      %111 = arith.cmpf ogt, %54, %cst_69 : f32
      %cst_70 = arith.constant 9.99999997E-7 : f32
      %112 = arith.select %111, %110, %cst_70 : f32
      %c0_71 = arith.constant 0 : index
      %c0_72 = arith.constant 0 : index
      %113 = memref.load %arg14[%c0_71, %c0_72] : memref<1x4xf32, #tpu.memory_space<smem>>
      memref.store %49, %arg14[%c0_71, %c0_72] : memref<1x4xf32, #tpu.memory_space<smem>>
      %c0_73 = arith.constant 0 : index
      %c1 = arith.constant 1 : index
      %114 = memref.load %arg14[%c0_73, %c1] : memref<1x4xf32, #tpu.memory_space<smem>>
      memref.store %112, %arg14[%c0_73, %c1] : memref<1x4xf32, #tpu.memory_space<smem>>
      %c0_74 = arith.constant 0 : index
      %c2 = arith.constant 2 : index
      %115 = memref.load %arg14[%c0_74, %c2] : memref<1x4xf32, #tpu.memory_space<smem>>
      memref.store %101, %arg14[%c0_74, %c2] : memref<1x4xf32, #tpu.memory_space<smem>>
      %c0_75 = arith.constant 0 : index
      %c3 = arith.constant 3 : index
      %116 = memref.load %arg14[%c0_75, %c3] : memref<1x4xf32, #tpu.memory_space<smem>>
      memref.store %54, %arg14[%c0_75, %c3] : memref<1x4xf32, #tpu.memory_space<smem>>
    } else {
    }
    return
  }
  func.func @transform_0(%arg0: i32) -> (i32, i32) {
    %c0_i32 = arith.constant 0 : i32
    %c0_i32_0 = arith.constant 0 : i32
    return %arg0, %c0_i32 : i32, i32
  }
  func.func @transform_1(%arg0: i32) -> (i32, i32) {
    %c0_i32 = arith.constant 0 : i32
    %c0_i32_0 = arith.constant 0 : i32
    return %arg0, %c0_i32 : i32, i32
  }
  func.func @transform_2(%arg0: i32) -> (i32, i32) {
    %c0_i32 = arith.constant 0 : i32
    %c0_i32_0 = arith.constant 0 : i32
    return %arg0, %c0_i32 : i32, i32
  }
  func.func @transform_3(%arg0: i32) -> (i32, i32) {
    %c0_i32 = arith.constant 0 : i32
    %c0_i32_0 = arith.constant 0 : i32
    return %c0_i32, %arg0 : i32, i32
  }
  func.func @transform_4(%arg0: i32) -> (i32, i32) {
    %c0_i32 = arith.constant 0 : i32
    %c0_i32_0 = arith.constant 0 : i32
    return %c0_i32, %arg0 : i32, i32
  }
  func.func @transform_5(%arg0: i32) -> (i32, i32) {
    %c0_i32 = arith.constant 0 : i32
    %c0_i32_0 = arith.constant 0 : i32
    return %c0_i32, %arg0 : i32, i32
  }
  func.func @transform_6(%arg0: i32) -> (i32, i32) {
    %c0_i32 = arith.constant 0 : i32
    %c0_i32_0 = arith.constant 0 : i32
    %c0_i32_1 = arith.constant 0 : i32
    return %c0_i32, %c0_i32_0 : i32, i32
  }
  func.func @transform_7(%arg0: i32) -> (i32, i32) {
    %c0_i32 = arith.constant 0 : i32
    %c0_i32_0 = arith.constant 0 : i32
    %c0_i32_1 = arith.constant 0 : i32
    return %c0_i32, %c0_i32_0 : i32, i32
  }
  func.func @transform_8(%arg0: i32) -> (i32, i32) {
    %c0_i32 = arith.constant 0 : i32
    %c0_i32_0 = arith.constant 0 : i32
    %c0_i32_1 = arith.constant 0 : i32
    return %c0_i32, %c0_i32_0 : i32, i32
  }
  func.func @transform_9(%arg0: i32) -> (i32, i32) {
    %c0_i32 = arith.constant 0 : i32
    %c0_i32_0 = arith.constant 0 : i32
    %c0_i32_1 = arith.constant 0 : i32
    return %c0_i32, %c0_i32_0 : i32, i32
  }
  func.func @transform_10(%arg0: i32) -> (i32, i32) {
    %c0_i32 = arith.constant 0 : i32
    %c0_i32_0 = arith.constant 0 : i32
    %c0_i32_1 = arith.constant 0 : i32
    return %c0_i32, %c0_i32_0 : i32, i32
  }
  func.func @transform_11(%arg0: i32) -> (i32, i32) {
    %c0_i32 = arith.constant 0 : i32
    %c0_i32_0 = arith.constant 0 : i32
    %c0_i32_1 = arith.constant 0 : i32
    return %c0_i32, %c0_i32_0 : i32, i32
  }
  func.func @transform_12(%arg0: i32) -> (i32, i32) {
    %c0_i32 = arith.constant 0 : i32
    %c0_i32_0 = arith.constant 0 : i32
    %c0_i32_1 = arith.constant 0 : i32
    return %c0_i32, %c0_i32_0 : i32, i32
  }
  func.func @transform_13(%arg0: i32) -> (i32, i32) {
    %c0_i32 = arith.constant 0 : i32
    %c0_i32_0 = arith.constant 0 : i32
    %c0_i32_1 = arith.constant 0 : i32
    return %c0_i32, %c0_i32_0 : i32, i32
  }
}

</mosaic_0001>

<bundles_post_ra>
// kernel: tpu_custom_call.1
= control target key start
LH: loop header
LB: loop body
LE: loop exit
PB: predicated region body
PF: predicated region fallthrough
CT: control target
= control target key end

     0   :  { %v606_v2 = vmov 0   ;;  %v607_v5 = vmov 0.0   ;;  %vm55_vm0 = vcmask 130048   ;;  %s858_s0 = inlined_call_operand.vmem [shape: f32[24,128], index: 0, kind: input, shape index: {}]   ;;  %s859_s1 = inlined_call_operand.vmem [shape: f32[24,128], index: 1, kind: input, shape index: {}]   ;;  %s860_s2 = inlined_call_operand.vmem [shape: f32[192,16], index: 2, kind: input, shape index: {}]   ;;  %s861_s3 = inlined_call_operand.vmem [shape: s32[1,192], index: 3, kind: input, shape index: {}]   ;;  %s862_s4 = inlined_call_operand.vmem [shape: f32[1,192], index: 4, kind: input, shape index: {}]   ;;  %s863_s5 = inlined_call_operand.vmem [shape: f32[1,192], index: 5, kind: input, shape index: {}]   ;;  %s864_s6 = inlined_call_operand.vmem [shape: s32[8,1], index: 6, kind: input, shape index: {}]   ;;  %s865_s7 = inlined_call_operand.vmem [shape: f32[8,1], index: 7, kind: input, shape index: {}]   ;;  %s866_s8 = inlined_call_operand.vmem [shape: f32[8,1], index: 8, kind: input, shape index: {}]   ;;  %s867_s9 = inlined_call_operand.vmem [shape: f32[8,1], index: 9, kind: input, shape index: {}]   ;;  %s868_s10 = inlined_call_operand.vmem [shape: f32[8,1], index: 10, kind: input, shape index: {}]   ;;  %s869_s11 = inlined_call_operand.vmem [shape: f32[16,2], index: 11, kind: input, shape index: {}]   ;;  %s870_s12 = inlined_call_operand.vmem [shape: f32[16,2], index: 12, kind: input, shape index: {}]   ;;  %s871_s13 = inlined_call_operand.hbm [shape: f32[1,4], index: 13, kind: output, shape index: {}]  }
   0x1   :  { %v97_v0 = vld [vmem:[%s864_s6] sm:$0xff]  ;;  %582 = vset.pattern.permute.xlu0 %v606_v2  ;;  %583 = vset.pattern.permute.xlu1 %v606_v2  ;;  %v170_v3 = vld [vmem:[%s860_s2 + $0x78] sm:$0xff]  ;;  %v169_v6 = vld [vmem:[%s860_s2 + $0x70] sm:$0xff]  ;;  %56 = vst.msk [vmem:[#allocation4] sm:$0xff] %vm55_vm0, %v607_v5 }
   0x2   :  { %v134_v1 = vld [vmem:[%s866_s8] sm:$0xff]  ;;  %107 = vperm.xlu0 %582, %v97_v0   ;;  %188 = vmatprep.subr.mxu0 %v607_v5  ;;  %v168_v7 = vld [vmem:[%s860_s2 + $0x68] sm:$0xff]  ;;  %v166_v9 = vld [vmem:[%s860_s2 + $0x58] sm:$0xff] }
   0x3   :  { %148 = vperm.xlu1 %583, %v134_v1   ;;  %v112_v4 = vld [vmem:[%s865_s7] sm:$0xff]  ;;  %552 = vmatprep.subr.mxu1 %v607_v5 }
   0x4   :  { %189 = vmatpush1.msra.mxu0 %v170_v3  ;;  %v167_v8 = vld [vmem:[%s860_s2 + $0x60] sm:$0xff] }
   0x5   :  { %190 = vmatprep.subr.mxu0 %v607_v5 }
   0x6   :  { %126 = vperm.xlu0 %582, %v112_v4   ;;  %191 = vmatpush1.msra.mxu0 %v169_v6 }
   0x7   :  { %308 = vperm.xlu1 %583, %v97_v0   ;;  %192 = vmatprep.subr.mxu0 %v607_v5 }
   0x8   :  { %193 = vmatpush1.msra.mxu0 %v168_v7 }
   0x9   :  { %194 = vmatprep.subr.mxu0 %v607_v5 }
   0xa   :  { %18 = vsyncpa [#allocation6], 0  ;;  %195 = vmatpush1.msra.mxu0 %v167_v8  ;;  %v165_v10 = vld [vmem:[%s860_s2 + $0x50] sm:$0xff]  ;;  %v164_v11 = vld [vmem:[%s860_s2 + $0x48] sm:$0xff]  ;;  %v98_v29 = vlaneseq  ;;  %vm184_vm9 = vcmask 523264   ;;  %v608_v46 = vmov 1.0  }
   0xb   :  { %196 = vmatprep.subr.mxu0 %v607_v5  ;;  %v163_v12 = vld [vmem:[%s860_s2 + $0x40] sm:$0xff]  ;;  %v162_v13 = vld [vmem:[%s860_s2 + $0x38] sm:$0xff]  ;;  %v161_v14 = vld [vmem:[%s860_s2 + $0x30] sm:$0xff]  ;;  %vm609_vm12 = vmmov 0   ;;  %vm461_vm14 = vcmask 15360   ;;  %s610_s23 = smov 1.0  }
   0xc   :  { %197 = vmatpush1.msra.mxu0 %v166_v9  ;;  %v160_v15 = vld [vmem:[%s860_s2 + $0x28] sm:$0xff]  ;;  %v159_v16 = vld [vmem:[%s860_s2 + $0x20] sm:$0xff]  ;;  %v158_v17 = vld [vmem:[%s860_s2 + $0x18] sm:$0xff]  ;;  %v99_v30 = vshrl.u32 %v98_v29, 7  ;;  %556 = vmatprep.mubr.msk.f32.mxu1 %vm609_vm12, %v607_v5  ;;  %v306_v0 = vand.u32 127, %v98_v29  ;;  %s611_s25 = smov [#allocation5]  }
   0xd   :  { %198 = vmatprep.subr.mxu0 %v607_v5  ;;  %v157_v18 = vld [vmem:[%s860_s2 + $0x10] sm:$0xff]  ;;  %v156_v19 = vld [vmem:[%s860_s2 + $0x8] sm:$0xff]  ;;  %v155_v20 = vld [vmem:[%s860_s2] sm:$0xff] }
   0xe   :  { %199 = vmatpush1.msra.mxu0 %v165_v10  ;;  %v178_v21 = vld [vmem:[%s860_s2 + $0xb8] sm:$0xff]  ;;  %v177_v22 = vld [vmem:[%s860_s2 + $0xb0] sm:$0xff]  ;;  %v176_v23 = vld [vmem:[%s860_s2 + $0xa8] sm:$0xff]  ;;  %v100_v31 = vsub.s32 0, %v99_v30  ;;  %v104_v32 = vsub.s32 1, %v99_v30 }
   0xf   :  { %200 = vmatprep.subr.mxu0 %v607_v5  ;;  %v175_v24 = vld [vmem:[%s860_s2 + $0xa0] sm:$0xff]  ;;  %v174_v25 = vld [vmem:[%s860_s2 + $0x98] sm:$0xff]  ;;  %v173_v26 = vld [vmem:[%s860_s2 + $0x90] sm:$0xff] }
  0x10   :  { %201 = vmatpush1.msra.mxu0 %v164_v11  ;;  %v172_v27 = vld [vmem:[%s860_s2 + $0x88] sm:$0xff]  ;;  %v171_v28 = vld [vmem:[%s860_s2 + $0x80] sm:$0xff]  ;;  %v59_v61 = vld [vmem:[%s858_s0 + $0x10] sm:$0xff] }
  0x11   :  { %202 = vmatprep.subr.mxu0 %v607_v5  ;;  %v96_v33 = vld [vmem:[%s861_s3] sm:$0x3]  ;;  %v314_v47 = vld [vmem:[%s869_s11 + $0x8] sm:$0xff]  ;;  %v68_v62 = vadd.f32 1e-06, %v59_v61  ;;  %v62_v7 = vld [vmem:[%s859_s1 + $0x10] sm:$0xff] }
  0x12   :  { %203 = vmatpush1.msra.mxu0 %v163_v12  ;;  %v133_v34 = vld [vmem:[%s863_s5] sm:$0x3]  ;;  %v101_v37 = vrot.slane %v96_v33, %v100_v31  ;;  %v105_v41 = vrot.slane %v96_v33, %v104_v32  ;;  %553 = vmatpush3.msra.mxu1 %v314_v47  ;;  %v389_v53 = vld [vmem:[%s870_s12 + $0x8] sm:$0xff] }
  0x13   :  { %204 = vmatprep.subr.mxu0 %v607_v5  ;;  %v111_v35 = vld [vmem:[%s862_s4] sm:$0x3]  ;;  %v143_v38 = vrot.slane %v133_v34, %v104_v32  ;;  %v139_v42 = vrot.slane %v133_v34, %v100_v31  ;;  %554 = vmatprep.subr.mxu1 %v607_v5  ;;  %v58_v58 = vld [vmem:[%s858_s0 + $0x8] sm:$0xff] }
  0x14   :  { %205 = vmatpush1.msra.mxu0 %v162_v13  ;;  %v117_v39 = vrot.slane %v111_v35, %v100_v31  ;;  %v121_v40 = vrot.slane %v111_v35, %v104_v32  ;;  %v313_v48 = vld [vmem:[%s869_s11] sm:$0xff]  ;;  %v67_v60 = vadd.f32 1e-06, %v58_v58  ;;  %v61_v4 = vld [vmem:[%s859_s1 + $0x8] sm:$0xff]  ;;  %v65_v13 = vsub.f32 0.0, %v62_v7 }
  0x15   :  { %206 = vmatprep.subr.mxu0 %v607_v5  ;;  %555 = vmatpush3.msra.mxu1 %v313_v48  ;;  %v183_v49 = vld [vmem:[#allocation4] sm:$0xff]  ;;  %v64_v8 = vsub.f32 0.0, %v61_v4 }
  0x16   :  { %207 = vmatpush1.msra.mxu0 %v161_v14  ;;  %559 = vmatprep.subr.mxu1 %v607_v5  ;;  %v388_v56 = vld [vmem:[%s870_s12] sm:$0xff] }
  0x17   :  { %208 = vmatprep.subr.mxu0 %v607_v5  ;;  %v57_v57 = vld [vmem:[%s858_s0] sm:$0xff] }
  0x18   :  { %209 = vmatpush1.msra.mxu0 %v160_v15  ;;  %v66_v59 = vadd.f32 1e-06, %v57_v57  ;;  %v60_v1 = vld [vmem:[%s859_s1] sm:$0xff] }
  0x19   :  { %210 = vmatprep.subr.mxu0 %v607_v5  ;;  %v63_v6 = vsub.f32 0.0, %v60_v1 }
  0x1a   :  { %211 = vmatpush1.msra.mxu0 %v159_v16  ;;  %584 = vlog2.f32 %v66_v59 }
  0x1b   :  { %212 = vmatprep.subr.mxu0 %v607_v5  ;;  %586 = vlog2.f32 %v67_v60 }
  0x1c   :  { %213 = vmatpush1.msra.mxu0 %v158_v17  ;;  %588 = vlog2.f32 %v68_v62 }
  0x1d   :  { %214 = vmatprep.subr.mxu0 %v607_v5 }
  0x1e   :  { %215 = vmatpush1.msra.mxu0 %v157_v18  ;;  %v282_v18 = vadd.f32 %v61_v4, %v60_v1 }
  0x1f   :  { %216 = vmatprep.subr.mxu0 %v607_v5 }
  0x20   :  { %217 = vmatpush1.msra.mxu0 %v156_v19 }
  0x21   :  { %218 = vmatprep.subr.mxu0 %v607_v5 }
  0x22   :  { %219 = vmatpush1.msra.mxu0 %v155_v20 }
  0x23   :  { %236 = vmatprep.subr.mxu0 %v607_v5 }
  0x24   :  { %237 = vmatpush2.msra.mxu0 %v178_v21 }
  0x25   :  { %238 = vmatprep.subr.mxu0 %v607_v5 }
  0x26   :  { %239 = vmatpush2.msra.mxu0 %v177_v22 }
  0x27   :  { %240 = vmatprep.subr.mxu0 %v607_v5  ;;  %v585_v63 = vpop.eup %584 }
  0x28   :  { %241 = vmatpush2.msra.mxu0 %v176_v23  ;;  %v587_v2 = vpop.eup %586  ;;  %v70_v9 = vmul.f32 0.6931472, %v585_v63 }
  0x29   :  { %242 = vmatprep.subr.mxu0 %v607_v5  ;;  %v72_v10 = vmul.f32 0.6931472, %v587_v2  ;;  %v589_v11 = vpop.eup %588 }
  0x2a   :  { %243 = vmatpush2.msra.mxu0 %v175_v24  ;;  %v74_v15 = vmul.f32 0.6931472, %v589_v11  ;;  %v75_v16 = vmul.f32 %v70_v9, %v63_v6 }
  0x2b   :  { %244 = vmatprep.subr.mxu0 %v607_v5  ;;  %v76_v17 = vmul.f32 %v72_v10, %v64_v8 }
  0x2c   :  { %245 = vmatpush2.msra.mxu0 %v174_v25  ;;  %v77_v23 = vmul.f32 %v74_v15, %v65_v13  ;;  %v283_v25 = vadd.f32 %v282_v18, %v62_v7 }
  0x2d   :  { %246 = vmatprep.subr.mxu0 %v607_v5  ;;  %v267_v24 = vadd.f32 %v76_v17, %v75_v16 }
  0x2e   :  { %247 = vmatpush2.msra.mxu0 %v173_v26 }
  0x2f   :  { %248 = vmatprep.subr.mxu0 %v607_v5  ;;  %v268_v30 = vadd.f32 %v267_v24, %v77_v23 }
  0x30   :  { %249 = vmatpush2.msra.mxu0 %v172_v27 }
  0x31   :  { %250 = vmatprep.subr.mxu0 %v607_v5 }
  0x32   :  { %251 = vmatpush2.msra.mxu0 %v171_v28 }
  0x7d   :  { %v108_v36 = vpop.permute.xlu0 %107 }
  0x7e   :  { %v149_v43 = vpop.permute.xlu1 %148  ;;  %vm109_vm1 = vcmp.eq.s32.totalorder %v101_v37, %v108_v36  ;;  %vm110_vm5 = vcmp.eq.s32.totalorder %v105_v41, %v108_v36 }
  0x7f   :  { %vm152_vm2 = vcmp.eq.f32.partialorder %v143_v38, %v149_v43  ;;  %vm151_vm7 = vcmp.eq.f32.partialorder %v139_v42, %v149_v43  ;;  %v471_v38 = vld [vmem:[%s867_s9] sm:$0xff] }
  0x81   :  { %v127_v44 = vpop.permute.xlu0 %126 }
  0x82   :  { %vm129_vm3 = vcmp.eq.f32.partialorder %v117_v39, %v127_v44  ;;  %vm130_vm4 = vcmp.eq.f32.partialorder %v121_v40, %v127_v44  ;;  %v309_v3 = vpop.permute.xlu1 %308  ;;  %v473_v39 = vld [vmem:[%s868_s10] sm:$0xff] }
  0x83   :  { %vm131_vm6 = vmand %vm109_vm1, %vm129_vm3  ;;  %vm310_vm13 = vcmp.eq.s32.totalorder %v309_v3, %v306_v0 }
  0x84   :  { %vm132_vm8 = vmand %vm110_vm5, %vm130_vm4  ;;  %v543_v12 = vsel %vm310_vm13, 1.0, %v607_v5 }
  0x85   :  { %vm154_vm10 = vmand %vm132_vm8, %vm152_vm2 }
  0x86   :  { %v539_v45 = vsel %vm154_vm10, 1.0, %v607_v5  ;;  %vm153_vm11 = vmand %vm131_vm6, %vm151_vm7 }
  0x87   :  { %540 = vmatprep.mubr.msk.f32.mxu0 %vm184_vm9, %v539_v45 }
  0x88   :  { %541 = vmatmul.mubr.msk.f32.vlgmr.msra.gmra.mxu0 %vm153_vm11, %v608_v46 }
 0x148   :  { %v254_v50 = vpop.f32.mrf.mxu0 }
 0x149   :  { %v258_v51 = vadd.f32 %v254_v50, %v183_v49 }
 0x14a   :  { %v256_v52 = vpop.f32.mrf.mxu0 }
 0x14b   :  { %260 = vst.msk [vmem:[#allocation4] sm:$0xff] %vm55_vm0, %v258_v51 }
 0x152   :  { %v293_v54 = vld [vmem:[#allocation4] sm:$0xff] }
 0x153   :  { %557 = vmatmul.mubr.msk.f32.vlgmr.msra.gmra.mxu1 %vm55_vm0, %v293_v54  ;;  %v294_v55 = vsel %vm55_vm0, %v293_v54, 0.0 }
 0x154   :  { %560 = vmatpush3.msra.mxu1 %v389_v53  ;;  %295 = vadd.xlane.f32.xlu0 %v294_v55 }
 0x155   :  { %561 = vmatprep.subr.mxu1 %v607_v5  ;;  %563 = vmatprep.mubr.msk.f32.mxu1 %vm609_vm12, %v607_v5 }
 0x156   :  { %562 = vmatpush3.msra.mxu1 %v388_v56 }
 0x157   :  { %564 = vmatmul.mubr.msk.f32.vlgmr.msra.gmra.mxu1 %vm55_vm0, %v293_v54  ;;  %vm486_vm0 = vcmask 7168  }
 0x1dd   :  { %v296_v27 = vpop.xlane.xlu0 %295 }
 0x1de   :  { %vm297_vm15 = vcmp.gt.f32.partialorder %v296_v27, 0.0  ;;  %v300_v33 = vmax.f32 %v296_v27, 1e-12 }
 0x1df   :  { %v542_v31 = vsel %vm297_vm15, 1.0, %v607_v5 }
 0x1e0   :  { %v487_v32 = vsel %vm486_vm0, %v542_v31, 0.0  ;;  %590 = vrcp.f32 %v300_v33 }
 0x1ed   :  { %v591_v34 = vpop.eup %590 }
 0x1ee   :  { %v303_v36 = vsel %vm297_vm15, %v591_v34, 0.0 }
 0x213   :  { %v384_v14 = vpop.f32.mrf.mxu1 }
 0x214   :  { %v460_v19 = vmul.f32 %v543_v12, %v384_v14 }
 0x215   :  { %v558_v20 = vpop.f32.mrf.mxu1 }
 0x216   :  { %v462_v21 = vsel %vm461_vm14, %v460_v19, 0.0 }
 0x217   :  { %463 = vadd.xlane.f32.xlu1 %v462_v21  ;;  %v456_v22 = vpop.f32.mrf.mxu1 }
 0x218   :  { %v466_v26 = vmul.f32 %v543_v12, %v456_v22 }
 0x219   :  { %v565_v28 = vpop.f32.mrf.mxu1 }
 0x21a   :  { %v467_v29 = vsel %vm461_vm14, %v466_v26, 0.0 }
 0x21b   :  { %468 = vadd.xlane.f32.xlu0 %v467_v29  ;;  %284 = vadd.xlane.f32.xlu1 %v283_v25 }
 0x21f   :  { %269 = vadd.xlane.f32.xlu0 %v268_v30 }
 0x223   :  { %488 = vadd.xlane.f32.xlu0 %v487_v32 }
 0x2a0   :  { %v464_v35 = vpop.xlane.xlu1 %463 }
 0x2a1   :  { %v465_v37 = vmul.f32 %v464_v35, %v303_v36 }
 0x2a3   :  { %v472_v41 = vsub.f32 %v465_v37, %v471_v38 }
 0x2a4   :  { %v469_v40 = vpop.xlane.xlu0 %468  ;;  %v285_v5 = vpop.xlane.xlu1 %284 }
 0x2a5   :  { %v470_v42 = vmul.f32 %v469_v40, %v303_v36  ;;  %v286_v43 = vrot.slane %v285_v5, 4  ;;  %v475_v47 = vmul.f32 %v472_v41, %v472_v41 }
 0x2a7   :  { %v474_v44 = vsub.f32 %v470_v42, %v473_v39  ;;  %v287_v45 = vadd.f32 %v286_v43, %v285_v5 }
 0x2a8   :  { %v270_v46 = vpop.xlane.xlu0 %269 }
 0x2a9   :  { %v476_v48 = vmul.f32 %v474_v44, %v474_v44  ;;  %v271_v49 = vrot.slane %v270_v46, 4  ;;  %v288_v50 = vrot.slane %v287_v45, 2 }
 0x2ab   :  { %v477_v51 = vadd.f32 %v476_v48, %v475_v47  ;;  %v272_v52 = vadd.f32 %v271_v49, %v270_v46  ;;  %v289_v53 = vadd.f32 %v288_v50, %v287_v45 }
 0x2ac   :  { %v489_v54 = vpop.xlane.xlu0 %488 }
 0x2ad   :  { %592 = vrsqrt.f32 %v477_v51  ;;  %v273_v55 = vrot.slane %v272_v52, 2  ;;  %v490_v56 = vrot.slane %v489_v54, 4  ;;  %v290_v57 = vrot.slane %v289_v53, 1 }
 0x2ae   :  { %vm480_vm1 = vcmp.eq.f32.partialorder %v477_v51, inf  ;;  %v483_v6 = vand.u32 2147483648, %v477_v51  ;;  %vm482_vm2 = vcmp.eq.f32.partialorder %v477_v51, 0.0 }
 0x2af   :  { %v491_v58 = vadd.f32 %v490_v56, %v489_v54  ;;  %v274_v59 = vadd.f32 %v273_v55, %v272_v52  ;;  %v291_v62 = vadd.f32 %v290_v57, %v289_v53 }
 0x2b1   :  { %v492_v60 = vrot.slane %v491_v58, 2  ;;  %v275_v61 = vrot.slane %v274_v59, 1 }
 0x2b3   :  { %v493_v63 = vadd.f32 %v492_v60, %v491_v58  ;;  %v276_v0 = vadd.f32 %v275_v61, %v274_v59 }
 0x2b5   :  { %566 = vpush %v276_v0  ;;  %v494_v1 = vrot.slane %v493_v63, 1 }
 0x2b6   :  { %568 = vpush %v291_v62 }
 0x2b7   :  { %v495_v2 = vadd.f32 %v494_v1, %v493_v63 }
 0x2b9   :  { %570 = vpush %v495_v2 }
 0x2ba   :  { %v593_v3 = vpop.eup %592 }
 0x2bb   :  { %v479_v4 = vmul.f32 %v593_v3, %v477_v51 }
 0x2bd   :  { %v481_v7 = vsel %vm480_vm1, %v477_v51, %v479_v4 }
 0x2be   :  { %v484_v8 = vsel %vm482_vm2, %v483_v6, %v481_v7 }
 0x2bf   :  { %v485_v9 = vmul.f32 %v542_v31, %v484_v8 }
 0x2c1   :  { %v497_v10 = vsel %vm486_vm0, %v485_v9, 0.0 }
 0x2c2   :  { %498 = vadd.xlane.f32.xlu1 %v497_v10 }
 0x2e6   :  { %s567_s9 = spop %566 }
 0x2e7   :  { %s278_s10 = smul.f32 0.5, %s567_s9  ;;  %s569_s21 = spop %568 }
 0x2e8   :  { %524 = sst [smem:[#allocation5 + $0x3]] %s569_s21  ;;  %p515_p1 = scmp.gt.f32.partialorder %s569_s21, 0.0 }
 0x2e9   :  { %518 = sst [smem:[#allocation5]] %s278_s10 }
 0x2ea   :  { %s571_s22 = spop %570 }
 0x2eb   :  { %522 = sst [smem:[#allocation5 + $0x2]] %s571_s22  ;;  %s507_s24 = smax.f32 %s610_s23, %s571_s22 }
 0x2ec   :  { %v508_v11 = vstv %s507_s24  ;;  %p512_p0 = scmp.gt.f32.partialorder %s571_s22, 0.0 }
 0x2ed   :  { %594 = vrcp.f32 %v508_v11 }
 0x2fa   :  { %v595_v19 = vpop.eup %594 }
 0x34b   :  { %v499_v12 = vpop.xlane.xlu1 %498 }
 0x34c   :  { %v500_v13 = vrot.slane %v499_v12, 4 }
 0x34e   :  { %v501_v14 = vadd.f32 %v500_v13, %v499_v12 }
 0x350   :  { %v502_v15 = vrot.slane %v501_v14, 2 }
 0x352   :  { %v503_v16 = vadd.f32 %v502_v15, %v501_v14 }
 0x354   :  { %v504_v17 = vrot.slane %v503_v16, 1 }
 0x356   :  { %v505_v18 = vadd.f32 %v504_v17, %v503_v16 }
 0x358   :  { %572 = vpush %v505_v18 }
 0x359   :  { %574 = vpush %v595_v19 }
 0x389   :  { %s573_s2 = spop %572 }
 0x38a   :  { %s575_s3 = spop %574 }
 0x38b   :  { %s511_s4 = smul.f32 %s575_s3, %s573_s2 }
 0x38d   :  { %s513_s5 = smul.f32 0.5, %s511_s4 }
 0x38f   :  { %s873_s5 = smov (!%p512_p0, %s513_s5), 2.0 }
 0x390   :  { %s875_s5 = smov (!%p515_p1, %s873_s5), 1e-06 }
 0x391   :  { %520 = sst [smem:[#allocation5 + $0x1]] %s875_s5 }
 0x392   :  { %532 = dma.smem_to_hbm %s611_s25, 16, %s871_s13, [#allocation6]  }
 0x393   :  { %604 = dma.done.wait [#allocation6], 16  }
 0x394   :  { %605 = vsyncadd [#allocation6], 4294967280 }
 0x395   :  { %536 = sfence }
 0x396   :  { %537 = vsyncpa [#allocation6], 1 }

</bundles_post_ra>
